<compile_context>
chip_gen: v7x
topology: tpu7x:2x2x1
jax: 0.10.0
libtpu: 0.0.40
codegen_flags: <defaults>
</compile_context>

<pallas_src>
import jax
import jax.numpy as jnp
from jax import lax
from jax.experimental import pallas as pl
from jax.experimental.pallas import tpu as pltpu


_VMEM_LIMIT_BYTES = 32 * 1024 * 1024  # safe scoped-VMEM budget on v5e/v6e/v7x


def _conv_stats_kernel(x_ref, w_ref, b_ref, y_ref, ssum_ref, ssq_ref):
    # x_ref:    (1, H+2, (W+2)*Cin)   padded, width-folded image (resident across row bands)
    # w_ref:    (3, (W+2)*Cin, W*Cout) width-folded conv weights, one slab per dy
    # b_ref:    (1, W*Cout)            conv bias tiled along W
    # y_ref:    (1, tile_h, W*Cout)    conv output row band (lane-dense)
    # ssum_ref: (1, 1, 1, W*Cout)      per-tile per-lane sum
    # ssq_ref:  (1, 1, 1, W*Cout)      per-tile per-lane sum of squares
    tile_h = y_ref.shape[1]
    row0 = pl.multiple_of(pl.program_id(1) * tile_h, tile_h)

    # 3x3 conv == 3 row-tap MXU matmuls against the width-folded weight slabs.
    # Accumulation starts from the first dot (no zeros + 9 adds), all in f32.
    acc = jnp.dot(x_ref[0, pl.ds(row0, tile_h), :], w_ref[0],
                  preferred_element_type=jnp.float32)
    acc += jnp.dot(x_ref[0, pl.ds(row0 + 1, tile_h), :], w_ref[1],
                   preferred_element_type=jnp.float32)
    acc += jnp.dot(x_ref[0, pl.ds(row0 + 2, tile_h), :], w_ref[2],
                   preferred_element_type=jnp.float32)
    acc += b_ref[...]

    y_ref[0] = acc
    # Per-tile partial stats for BN (combined across tiles in the wrapper).
    ssum_ref[0, 0] = jnp.sum(acc, axis=0, keepdims=True)
    ssq_ref[0, 0] = jnp.sum(acc * acc, axis=0, keepdims=True)


def _bn_prelu_kernel(y_ref, s_ref, t_ref, a_ref, o_ref):
    # y_ref: (1, tile_h, W*Cout) conv output band; s_ref/t_ref: (1, W*Cout)
    # a_ref: (1,) PReLU slope in SMEM; o_ref: (1, tile_h, W*Cout)
    y = y_ref[0] * s_ref[...] + t_ref[...]   # fused BN affine, single pass
    a = a_ref[0]
    o_ref[0] = jnp.where(y >= 0.0, y, a * y)  # PReLU (shared slope)


@jax.jit
def enc_conv(x_nchw, w_oihw, bias, gamma, beta, prelu_a):
    """EncConv forward: x (N, Cin, H, W) -> (N, Cout, H, W), float32."""
    N, Cin, H, W = x_nchw.shape
    Cout = w_oihw.shape[0]
    Wp2 = W + 2
    WC = W * Cout           # lane width of the folded layout (128 for demo shapes)
    eps = 1e-5

    tile_h = 8 if H % 8 == 0 else H   # row-band tile (use ~128+ rows for real sizes)
    nH = H // tile_h

    # ---- layout prep (PyTorch-facing boundary; in a real stack the folded
    # NHWC layout would persist between layers instead of being rebuilt) ----
    x_nhwc = jnp.transpose(x_nchw, (0, 2, 3, 1)).astype(jnp.float32)
    xp = jnp.pad(x_nhwc, ((0, 0), (1, 1), (1, 1), (0, 0)))
    xf = xp.reshape(N, H + 2, Wp2 * Cin)                  # lane = x_in*Cin + ci

    # Width-folded conv weights:
    #   w_fold[dy, x_in*Cin+ci, x_out*Cout+co] = w[co, ci, dy, x_in-x_out]
    #   if 0 <= x_in-x_out <= 2 else 0.
    w_t = jnp.transpose(w_oihw, (2, 3, 1, 0)).astype(jnp.float32)   # (dy, dx, Cin, Cout)
    sel = (jnp.arange(Wp2)[None, :, None] - jnp.arange(W)[None, None, :]
           == jnp.arange(3)[:, None, None]).astype(jnp.float32)     # (dx, Wp2, W)
    w_fold = jnp.einsum('axo,daic->dxioc', sel, w_t).reshape(3, Wp2 * Cin, WC)

    b_row = jnp.tile(bias.astype(jnp.float32), W).reshape(1, WC)

    # ---- phase 1: conv (+bias) + per-tile per-lane sum / sum-of-squares ----
    y_conv, ssum, ssq = pl.pallas_call(
        _conv_stats_kernel,
        out_shape=(
            jax.ShapeDtypeStruct((N, H, WC), jnp.float32),
            jax.ShapeDtypeStruct((N, nH, 1, WC), jnp.float32),
            jax.ShapeDtypeStruct((N, nH, 1, WC), jnp.float32),
        ),
        grid=(N, nH),
        in_specs=[
            pl.BlockSpec((1, H + 2, Wp2 * Cin), lambda n, r: (n, 0, 0)),  # resident per image
            pl.BlockSpec((3, Wp2 * Cin, WC), lambda n, r: (0, 0, 0)),     # weights resident
            pl.BlockSpec((1, WC), lambda n, r: (0, 0)),
        ],
        out_specs=(
            pl.BlockSpec((1, tile_h, WC), lambda n, r: (n, r, 0)),
            pl.BlockSpec((1, 1, 1, WC), lambda n, r: (n, r, 0, 0)),
            pl.BlockSpec((1, 1, 1, WC), lambda n, r: (n, r, 0, 0)),
        ),
        compiler_params=pltpu.CompilerParams(
            dimension_semantics=("parallel", "parallel"),
            vmem_limit_bytes=_VMEM_LIMIT_BYTES),
    )(xf, w_fold, b_row)

    # ---- fold per-tile stats into per-channel BN scale/shift (tiny, plain JAX) ----
    count = float(N * H * W)
    mean = jnp.sum(ssum.reshape(-1, W, Cout), axis=(0, 1)) / count
    # NOTE: E[x^2] - E[x]^2 in f32; fine at conv-activation scale. Switch to a
    # centered / parallel-merge variance if activation magnitudes become large.
    var = jnp.sum(ssq.reshape(-1, W, Cout), axis=(0, 1)) / count - mean * mean
    scale = gamma.astype(jnp.float32) * lax.rsqrt(var + eps)
    shift = beta.astype(jnp.float32) - mean * scale
    s_row = jnp.tile(scale, W).reshape(1, WC)
    t_row = jnp.tile(shift, W).reshape(1, WC)

    # ---- phase 2: fused BN affine + PReLU, lane-dense single pass ----
    out_f = pl.pallas_call(
        _bn_prelu_kernel,
        out_shape=jax.ShapeDtypeStruct((N, H, WC), jnp.float32),
        grid=(N, nH),
        in_specs=[
            pl.BlockSpec((1, tile_h, WC), lambda n, r: (n, r, 0)),
            pl.BlockSpec((1, WC), lambda n, r: (0, 0)),
            pl.BlockSpec((1, WC), lambda n, r: (0, 0)),
            pl.BlockSpec(memory_space=pltpu.MemorySpace.SMEM),
        ],
        out_specs=pl.BlockSpec((1, tile_h, WC), lambda n, r: (n, r, 0)),
        compiler_params=pltpu.CompilerParams(
            dimension_semantics=("parallel", "parallel"),
            vmem_limit_bytes=_VMEM_LIMIT_BYTES),
    )(y_conv, s_row, t_row, prelu_a.reshape(1).astype(jnp.float32))

    # Unpack lane-dense (N, H, W*Cout) -> NCHW at the PyTorch-facing boundary.
    return jnp.transpose(out_f.reshape(N, H, W, Cout), (0, 3, 1, 2))


def _reference(x_nchw, w_oihw, bias, gamma, beta, prelu_a):
    """Pure-JAX reference mirroring the PyTorch forward (training-mode BN)."""
    y = lax.conv_general_dilated(
        x_nchw, w_oihw, window_strides=(1, 1), padding="SAME",
        dimension_numbers=("NCHW", "OIHW", "NCHW"))
    y = y + bias[None, :, None, None]
    mean = y.mean(axis=(0, 2, 3), keepdims=True)
    var = y.var(axis=(0, 2, 3), keepdims=True)  # biased
    y = gamma[None, :, None, None] * (y - mean) / jnp.sqrt(var + 1e-5) \
        + beta[None, :, None, None]
    y = jnp.where(y >= 0, y, prelu_a * y)
    return y


if __name__ == "__main__":
    key = jax.random.PRNGKey(0)
    N, Cin, Cout, H, W = 2, 4, 8, 16, 16

    k_x, k_w, k_b = jax.random.split(key, 3)
    x = jax.random.normal(k_x, (N, Cin, H, W), dtype=jnp.float32)

    # Deterministic parameter init (shapes from EncConv.__init__)
    fan_in = Cin * 3 * 3
    bound = 1.0 / (fan_in ** 0.5)
    w_conv = jax.random.uniform(k_w, (Cout, Cin, 3, 3), jnp.float32, -bound, bound)
    b_conv = jax.random.uniform(k_b, (Cout,), jnp.float32, -bound, bound)
    gamma = jnp.ones((Cout,), jnp.float32)        # BatchNorm2d weight init
    beta = jnp.zeros((Cout,), jnp.float32)        # BatchNorm2d bias init
    prelu_a = jnp.array(0.25, jnp.float32)        # PReLU default init

    out = enc_conv(x, w_conv, b_conv, gamma, beta, prelu_a)
    out = jax.block_until_ready(out)

    ref = _reference(x, w_conv, b_conv, gamma, beta, prelu_a)
    assert out.shape == (N, Cout, H, W)
    err = jnp.max(jnp.abs(out - ref))
    assert jnp.allclose(out, ref, atol=2e-4, rtol=2e-4), f"max abs err {err}"

    print("KERNEL_OK")
</pallas_src>

<mosaic_0001>
module attributes {stable_mosaic.version = 11 : i64} {
  func.func @_conv_stats_kernel(%arg0: i32, %arg1: i32, %arg2: memref<1x18x72xf32, #tpu.memory_space<vmem>>, %arg3: memref<3x72x128xf32, #tpu.memory_space<vmem>>, %arg4: memref<1x128xf32, #tpu.memory_space<vmem>>, %arg5: memref<1x8x128xf32, #tpu.memory_space<vmem>>, %arg6: memref<1x1x1x128xf32, #tpu.memory_space<vmem>>, %arg7: memref<1x1x1x128xf32, #tpu.memory_space<vmem>>) attributes {dimension_semantics = [#tpu.dimension_semantics<parallel>, #tpu.dimension_semantics<parallel>], iteration_bounds = array<i64: 2, 2>, scalar_prefetch = 0 : i64, scratch_operands = 0 : i64, tpu.core_type = #tpu.core_type<tc>, window_params = [{transform_indices = @transform_0, window_bounds = array<i64: 1, 18, 72>}, {pipeline_mode = #tpu.pipeline_mode<synchronous>, transform_indices = @transform_1, window_bounds = array<i64: 3, 72, 128>}, {pipeline_mode = #tpu.pipeline_mode<synchronous>, transform_indices = @transform_2, window_bounds = array<i64: 1, 128>}, {transform_indices = @transform_3, window_bounds = array<i64: 1, 8, 128>}, {transform_indices = @transform_4, window_bounds = array<i64: 1, 1, 1, 128>}, {transform_indices = @transform_5, window_bounds = array<i64: 1, 1, 1, 128>}]} {
    %c8_i32 = arith.constant 8 : i32
    %0 = arith.muli %arg1, %c8_i32 : i32
    %1 = tpu.assume_multiple %0, 8 : i32
    %c0 = arith.constant 0 : index
    %2 = arith.index_cast %1 : i32 to index
    %c0_0 = arith.constant 0 : index
    %3 = vector.load %arg2[%c0, %2, %c0_0] : memref<1x18x72xf32, #tpu.memory_space<vmem>>, vector<1x8x72xf32>
    %4 = vector.shape_cast %3 : vector<1x8x72xf32> to vector<8x72xf32>
    %c0_1 = arith.constant 0 : index
    %c0_2 = arith.constant 0 : index
    %c0_3 = arith.constant 0 : index
    %5 = vector.load %arg3[%c0_1, %c0_2, %c0_3] : memref<3x72x128xf32, #tpu.memory_space<vmem>>, vector<1x72x128xf32>
    %6 = vector.shape_cast %5 : vector<1x72x128xf32> to vector<72x128xf32>
    %cst = arith.constant dense<0.000000e+00> : vector<8x128xf32>
    %7 = tpu.matmul %4, %6, %cst {dimension_numbers = #tpu.dot_dimension_numbers<[1], [0], [0], [1], [0, 0, 1, 1], [], []>} : vector<8x72xf32>, vector<72x128xf32>, vector<8x128xf32> -> vector<8x128xf32>
    %c1_i32 = arith.constant 1 : i32
    %8 = arith.addi %1, %c1_i32 : i32
    %c0_4 = arith.constant 0 : index
    %9 = arith.index_cast %8 : i32 to index
    %c0_5 = arith.constant 0 : index
    %10 = vector.load %arg2[%c0_4, %9, %c0_5] : memref<1x18x72xf32, #tpu.memory_space<vmem>>, vector<1x8x72xf32>
    %11 = vector.shape_cast %10 : vector<1x8x72xf32> to vector<8x72xf32>
    %c1 = arith.constant 1 : index
    %c0_6 = arith.constant 0 : index
    %c0_7 = arith.constant 0 : index
    %12 = vector.load %arg3[%c1, %c0_6, %c0_7] : memref<3x72x128xf32, #tpu.memory_space<vmem>>, vector<1x72x128xf32>
    %13 = vector.shape_cast %12 : vector<1x72x128xf32> to vector<72x128xf32>
    %cst_8 = arith.constant dense<0.000000e+00> : vector<8x128xf32>
    %14 = tpu.matmul %11, %13, %cst_8 {dimension_numbers = #tpu.dot_dimension_numbers<[1], [0], [0], [1], [0, 0, 1, 1], [], []>} : vector<8x72xf32>, vector<72x128xf32>, vector<8x128xf32> -> vector<8x128xf32>
    %15 = arith.addf %7, %14 : vector<8x128xf32>
    %c2_i32 = arith.constant 2 : i32
    %16 = arith.addi %1, %c2_i32 : i32
    %c0_9 = arith.constant 0 : index
    %17 = arith.index_cast %16 : i32 to index
    %c0_10 = arith.constant 0 : index
    %18 = vector.load %arg2[%c0_9, %17, %c0_10] : memref<1x18x72xf32, #tpu.memory_space<vmem>>, vector<1x8x72xf32>
    %19 = vector.shape_cast %18 : vector<1x8x72xf32> to vector<8x72xf32>
    %c2 = arith.constant 2 : index
    %c0_11 = arith.constant 0 : index
    %c0_12 = arith.constant 0 : index
    %20 = vector.load %arg3[%c2, %c0_11, %c0_12] : memref<3x72x128xf32, #tpu.memory_space<vmem>>, vector<1x72x128xf32>
    %21 = vector.shape_cast %20 : vector<1x72x128xf32> to vector<72x128xf32>
    %cst_13 = arith.constant dense<0.000000e+00> : vector<8x128xf32>
    %22 = tpu.matmul %19, %21, %cst_13 {dimension_numbers = #tpu.dot_dimension_numbers<[1], [0], [0], [1], [0, 0, 1, 1], [], []>} : vector<8x72xf32>, vector<72x128xf32>, vector<8x128xf32> -> vector<8x128xf32>
    %23 = arith.addf %15, %22 : vector<8x128xf32>
    %c0_14 = arith.constant 0 : index
    %c0_15 = arith.constant 0 : index
    %24 = vector.load %arg4[%c0_14, %c0_15] : memref<1x128xf32, #tpu.memory_space<vmem>>, vector<1x128xf32>
    %25 = vector.broadcast %24 : vector<1x128xf32> to vector<8x128xf32>
    %26 = arith.addf %23, %25 : vector<8x128xf32>
    %c0_16 = arith.constant 0 : index
    %c0_17 = arith.constant 0 : index
    %c0_18 = arith.constant 0 : index
    %27 = vector.load %arg5[%c0_16, %c0_17, %c0_18] : memref<1x8x128xf32, #tpu.memory_space<vmem>>, vector<1x8x128xf32>
    %28 = vector.shape_cast %27 : vector<1x8x128xf32> to vector<8x128xf32>
    %29 = vector.shape_cast %26 : vector<8x128xf32> to vector<1x8x128xf32>
    tpu.vector_store %arg5[%c0_16, %c0_17, %c0_18], %29 {strides = array<i32>} : memref<1x8x128xf32, #tpu.memory_space<vmem>>, vector<1x8x128xf32>,
    %cst_19 = arith.constant dense<0.000000e+00> : vector<128xf32>
    %30 = vector.multi_reduction <add>, %26, %cst_19 [0] : vector<8x128xf32> to vector<128xf32>
    %31 = vector.shape_cast %30 : vector<128xf32> to vector<1x128xf32>
    %c0_20 = arith.constant 0 : index
    %c0_21 = arith.constant 0 : index
    %c0_22 = arith.constant 0 : index
    %c0_23 = arith.constant 0 : index
    %32 = vector.load %arg6[%c0_20, %c0_21, %c0_22, %c0_23] : memref<1x1x1x128xf32, #tpu.memory_space<vmem>>, vector<1x1x1x128xf32>
    %33 = vector.shape_cast %32 : vector<1x1x1x128xf32> to vector<1x128xf32>
    %34 = vector.shape_cast %31 : vector<1x128xf32> to vector<1x1x1x128xf32>
    tpu.vector_store %arg6[%c0_20, %c0_21, %c0_22, %c0_23], %34 {strides = array<i32>} : memref<1x1x1x128xf32, #tpu.memory_space<vmem>>, vector<1x1x1x128xf32>,
    %35 = arith.mulf %26, %26 : vector<8x128xf32>
    %cst_24 = arith.constant dense<0.000000e+00> : vector<128xf32>
    %36 = vector.multi_reduction <add>, %35, %cst_24 [0] : vector<8x128xf32> to vector<128xf32>
    %37 = vector.shape_cast %36 : vector<128xf32> to vector<1x128xf32>
    %c0_25 = arith.constant 0 : index
    %c0_26 = arith.constant 0 : index
    %c0_27 = arith.constant 0 : index
    %c0_28 = arith.constant 0 : index
    %38 = vector.load %arg7[%c0_25, %c0_26, %c0_27, %c0_28] : memref<1x1x1x128xf32, #tpu.memory_space<vmem>>, vector<1x1x1x128xf32>
    %39 = vector.shape_cast %38 : vector<1x1x1x128xf32> to vector<1x128xf32>
    %40 = vector.shape_cast %37 : vector<1x128xf32> to vector<1x1x1x128xf32>
    tpu.vector_store %arg7[%c0_25, %c0_26, %c0_27, %c0_28], %40 {strides = array<i32>} : memref<1x1x1x128xf32, #tpu.memory_space<vmem>>, vector<1x1x1x128xf32>,
    return
  }
  func.func @transform_0(%arg0: i32, %arg1: i32) -> (i32, i32, i32) {
    %c0_i32 = arith.constant 0 : i32
    %c0_i32_0 = arith.constant 0 : i32
    %c0_i32_1 = arith.constant 0 : i32
    return %arg0, %c0_i32, %c0_i32_0 : i32, i32, i32
  }
  func.func @transform_1(%arg0: i32, %arg1: i32) -> (i32, i32, i32) {
    %c0_i32 = arith.constant 0 : i32
    %c0_i32_0 = arith.constant 0 : i32
    %c0_i32_1 = arith.constant 0 : i32
    %c0_i32_2 = arith.constant 0 : i32
    return %c0_i32, %c0_i32_0, %c0_i32_1 : i32, i32, i32
  }
  func.func @transform_2(%arg0: i32, %arg1: i32) -> (i32, i32) {
    %c0_i32 = arith.constant 0 : i32
    %c0_i32_0 = arith.constant 0 : i32
    %c0_i32_1 = arith.constant 0 : i32
    return %c0_i32, %c0_i32_0 : i32, i32
  }
  func.func @transform_3(%arg0: i32, %arg1: i32) -> (i32, i32, i32) {
    %c0_i32 = arith.constant 0 : i32
    %c0_i32_0 = arith.constant 0 : i32
    return %arg0, %arg1, %c0_i32 : i32, i32, i32
  }
  func.func @transform_4(%arg0: i32, %arg1: i32) -> (i32, i32, i32, i32) {
    %c0_i32 = arith.constant 0 : i32
    %c0_i32_0 = arith.constant 0 : i32
    %c0_i32_1 = arith.constant 0 : i32
    return %arg0, %arg1, %c0_i32, %c0_i32_0 : i32, i32, i32, i32
  }
  func.func @transform_5(%arg0: i32, %arg1: i32) -> (i32, i32, i32, i32) {
    %c0_i32 = arith.constant 0 : i32
    %c0_i32_0 = arith.constant 0 : i32
    %c0_i32_1 = arith.constant 0 : i32
    return %arg0, %arg1, %c0_i32, %c0_i32_0 : i32, i32, i32, i32
  }
}

module attributes {stable_mosaic.version = 11 : i64} {
  func.func @_bn_prelu_kernel(%arg0: i32, %arg1: i32, %arg2: memref<1x8x128xf32, #tpu.memory_space<vmem>>, %arg3: memref<1x128xf32, #tpu.memory_space<vmem>>, %arg4: memref<1x128xf32, #tpu.memory_space<vmem>>, %arg5: memref<1xf32, #tpu.memory_space<smem>>, %arg6: memref<1x8x128xf32, #tpu.memory_space<vmem>>) attributes {dimension_semantics = [#tpu.dimension_semantics<parallel>, #tpu.dimension_semantics<parallel>], iteration_bounds = array<i64: 2, 2>, scalar_prefetch = 0 : i64, scratch_operands = 0 : i64, tpu.core_type = #tpu.core_type<tc>, window_params = [{transform_indices = @transform_0, window_bounds = array<i64: 1, 8, 128>}, {pipeline_mode = #tpu.pipeline_mode<synchronous>, transform_indices = @transform_1, window_bounds = array<i64: 1, 128>}, {pipeline_mode = #tpu.pipeline_mode<synchronous>, transform_indices = @transform_2, window_bounds = array<i64: 1, 128>}, {transform_indices = @transform_3, window_bounds = array<i64: 1>}, {transform_indices = @transform_4, window_bounds = array<i64: 1, 8, 128>}]} {
    %c0 = arith.constant 0 : index
    %c0_0 = arith.constant 0 : index
    %c0_1 = arith.constant 0 : index
    %0 = vector.load %arg2[%c0, %c0_0, %c0_1] : memref<1x8x128xf32, #tpu.memory_space<vmem>>, vector<1x8x128xf32>
    %1 = vector.shape_cast %0 : vector<1x8x128xf32> to vector<8x128xf32>
    %c0_2 = arith.constant 0 : index
    %c0_3 = arith.constant 0 : index
    %2 = vector.load %arg3[%c0_2, %c0_3] : memref<1x128xf32, #tpu.memory_space<vmem>>, vector<1x128xf32>
    %3 = vector.broadcast %2 : vector<1x128xf32> to vector<8x128xf32>
    %4 = arith.mulf %1, %3 : vector<8x128xf32>
    %c0_4 = arith.constant 0 : index
    %c0_5 = arith.constant 0 : index
    %5 = vector.load %arg4[%c0_4, %c0_5] : memref<1x128xf32, #tpu.memory_space<vmem>>, vector<1x128xf32>
    %6 = vector.broadcast %5 : vector<1x128xf32> to vector<8x128xf32>
    %7 = arith.addf %4, %6 : vector<8x128xf32>
    %c0_6 = arith.constant 0 : index
    %8 = memref.load %arg5[%c0_6] : memref<1xf32, #tpu.memory_space<smem>>
    %cst = arith.constant 0.000000e+00 : f32
    %9 = vector.broadcast %cst : f32 to vector<8x128xf32>
    %10 = arith.cmpf oge, %7, %9 : vector<8x128xf32>
    %11 = vector.broadcast %8 : f32 to vector<8x128xf32>
    %12 = arith.mulf %11, %7 : vector<8x128xf32>
    %13 = arith.select %10, %7, %12 : vector<8x128xi1>, vector<8x128xf32>
    %c0_7 = arith.constant 0 : index
    %c0_8 = arith.constant 0 : index
    %c0_9 = arith.constant 0 : index
    %14 = vector.load %arg6[%c0_7, %c0_8, %c0_9] : memref<1x8x128xf32, #tpu.memory_space<vmem>>, vector<1x8x128xf32>
    %15 = vector.shape_cast %14 : vector<1x8x128xf32> to vector<8x128xf32>
    %16 = vector.shape_cast %13 : vector<8x128xf32> to vector<1x8x128xf32>
    tpu.vector_store %arg6[%c0_7, %c0_8, %c0_9], %16 {strides = array<i32>} : memref<1x8x128xf32, #tpu.memory_space<vmem>>, vector<1x8x128xf32>,
    return
  }
  func.func @transform_0(%arg0: i32, %arg1: i32) -> (i32, i32, i32) {
    %c0_i32 = arith.constant 0 : i32
    %c0_i32_0 = arith.constant 0 : i32
    return %arg0, %arg1, %c0_i32 : i32, i32, i32
  }
  func.func @transform_1(%arg0: i32, %arg1: i32) -> (i32, i32) {
    %c0_i32 = arith.constant 0 : i32
    %c0_i32_0 = arith.constant 0 : i32
    %c0_i32_1 = arith.constant 0 : i32
    return %c0_i32, %c0_i32_0 : i32, i32
  }
  func.func @transform_2(%arg0: i32, %arg1: i32) -> (i32, i32) {
    %c0_i32 = arith.constant 0 : i32
    %c0_i32_0 = arith.constant 0 : i32
    %c0_i32_1 = arith.constant 0 : i32
    return %c0_i32, %c0_i32_0 : i32, i32
  }
  func.func @transform_3(%arg0: i32, %arg1: i32) -> i32 {
    %c0_i32 = arith.constant 0 : i32
    %c0_i32_0 = arith.constant 0 : i32
    return %c0_i32 : i32
  }
  func.func @transform_4(%arg0: i32, %arg1: i32) -> (i32, i32, i32) {
    %c0_i32 = arith.constant 0 : i32
    %c0_i32_0 = arith.constant 0 : i32
    return %arg0, %arg1, %c0_i32 : i32, i32, i32
  }
}

</mosaic_0001>

<bundles_post_ra>
// kernel: tile.18
= control target key start
LH: loop header
LB: loop body
LE: loop exit
PB: predicated region body
PF: predicated region fallthrough
CT: control target
= control target key end

     0   :  { %s28_s0 = inlined_call_operand.vmem [shape: f32[8], index: 0, kind: input, shape index: {}]   ;;  %s29_s1 = inlined_call_operand.vmem [shape: f32[16,8], index: 1, kind: output, shape index: {}]  }
   0x1   :  { %v4_v0 = vld [vmem:[%s28_s0] ss:$0 sm:$0xff] }
   0x2   :  { %5 = vst [vmem:[%s29_s1] sm:$0xff] %v4_v0  ;;  %8 = vst [vmem:[%s29_s1 + $0x8] sm:$0xff] %v4_v0 }

// kernel: tile.19
= control target key start
LH: loop header
LB: loop body
LE: loop exit
PB: predicated region body
PF: predicated region fallthrough
CT: control target
= control target key end

     0   :  { %s131_s10 = smov 120   ;;  %s132_s11 = smov 104   ;;  %vm3_vm0 = vcmask 64512   ;;  %vm9_vm1 = vcmask 1048512   ;;  %vm15_vm2 = vcmask 982912   ;;  %vm21_vm3 = vcmask 917312   ;;  %s207_s0 = inlined_call_operand.vmem [shape: f32[16,8], index: 0, kind: input, shape index: {}]   ;;  %s208_s1 = inlined_call_operand.vmem [shape: f32[1,128], index: 1, kind: output, shape index: {}]  }
   0x1   :  { %v101_v0 = vld [vmem:[%s207_s0 + $0xf] sm:$0x1]   ;;  %v103_v1 = vld [vmem:[%s207_s0 + $0xd] sm:$0x1]   ;;  %v102_v2 = vld [vmem:[%s207_s0 + $0xe] sm:$0x1]  }
   0x2   :  { %7 = vrot.lane.b32.xlu0 %v101_v0, %s131_s10  ;;  %19 = vrot.lane.b32.xlu1 %v103_v1, %s132_s11  ;;  %v104_v3 = vld [vmem:[%s207_s0 + $0xc] sm:$0x1]   ;;  %s133_s16 = smov 112   ;;  %s134_s17 = smov 96   ;;  %v105_v4 = vld [vmem:[%s207_s0 + $0xb] sm:$0x1]  }
   0x3   :  { %v106_v5 = vld [vmem:[%s207_s0 + $0xa] sm:$0x1]   ;;  %v2_v6 = vld [vmem:[%s207_s0] sm:$0x1]   ;;  %s135_s24 = smov 88   ;;  %s136_s25 = smov 80  }
   0x4   :  { %4 = vst.msk [vmem:[#allocation0] sm:$0x1] %vm3_vm0, %v2_v6   ;;  %v107_v7 = vld [vmem:[%s207_s0 + $0x9] sm:$0x1]   ;;  %v108_v8 = vld [vmem:[%s207_s0 + $0x8] sm:$0x1]  }
   0x5   :  { %s137_s30 = smov 72   ;;  %s138_s2 = smov 64   ;;  %v109_v9 = vld [vmem:[%s207_s0 + $0x7] sm:$0x1]   ;;  %v110_v10 = vld [vmem:[%s207_s0 + $0x6] sm:$0x1]  }
   0x6   :  { %13 = vrot.lane.b32.xlu0 %v102_v2, %s133_s16  ;;  %25 = vrot.lane.b32.xlu1 %v104_v3, %s134_s17  ;;  %s139_s7 = smov 56   ;;  %s140_s8 = smov 48   ;;  %v111_v11 = vld [vmem:[%s207_s0 + $0x5] sm:$0x1]   ;;  %v112_v12 = vld [vmem:[%s207_s0 + $0x4] sm:$0x1]  }
   0x7   :  { %s141_s13 = smov 40   ;;  %s142_s14 = smov 32   ;;  %v113_v13 = vld [vmem:[%s207_s0 + $0x3] sm:$0x1]   ;;  %v114_v14 = vld [vmem:[%s207_s0 + $0x2] sm:$0x1]  }
   0x8   :  { %s143_s19 = smov 24   ;;  %s144_s20 = smov 16   ;;  %v115_v15 = vld [vmem:[%s207_s0 + $0x1] sm:$0x1]   ;;  %vm27_vm4 = vcmask 851712   ;;  %vm33_vm5 = vcmask 786112  }
   0x9   :  { %s145_s0 = smov 8   ;;  %vm39_vm6 = vcmask 720512   ;;  %vm45_vm7 = vcmask 654912   ;;  %vm51_vm8 = vcmask 589312   ;;  %vm57_vm9 = vcmask 523712  }
   0xa   :  { %31 = vrot.lane.b32.xlu0 %v105_v4, %s135_s24  ;;  %37 = vrot.lane.b32.xlu1 %v106_v5, %s136_s25  ;;  %vm63_vm10 = vcmask 458112   ;;  %vm69_vm11 = vcmask 392512   ;;  %vm75_vm12 = vcmask 326912   ;;  %vm81_vm13 = vcmask 261312  }
   0xb   :  { %vm87_vm14 = vcmask 195712   ;;  %vm93_vm15 = vcmask 130112  }
   0xe   :  { %43 = vrot.lane.b32.xlu0 %v107_v7, %s137_s30  ;;  %49 = vrot.lane.b32.xlu1 %v108_v8, %s138_s2 }
  0x12   :  { %55 = vrot.lane.b32.xlu0 %v109_v9, %s139_s7  ;;  %61 = vrot.lane.b32.xlu1 %v110_v10, %s140_s8 }
  0x16   :  { %67 = vrot.lane.b32.xlu0 %v111_v11, %s141_s13  ;;  %73 = vrot.lane.b32.xlu1 %v112_v12, %s142_s14 }
  0x1a   :  { %79 = vrot.lane.b32.xlu0 %v113_v13, %s143_s19  ;;  %85 = vrot.lane.b32.xlu1 %v114_v14, %s144_s20 }
  0x1e   :  { %91 = vrot.lane.b32.xlu0 %v115_v15, %s145_s0 }
  0x74   :  { %v8_v16 = vpop.permute.xlu0 %7   ;;  %v20_v17 = vpop.permute.xlu1 %19  }
  0x75   :  { %10 = vst.msk [vmem:[#allocation0] sm:$0x1] %vm9_vm1, %v8_v16  }
  0x78   :  { %v14_v18 = vpop.permute.xlu0 %13   ;;  %v26_v19 = vpop.permute.xlu1 %25  }
  0x79   :  { %16 = vst.msk [vmem:[#allocation0] sm:$0x1] %vm15_vm2, %v14_v18  }
  0x7a   :  { %22 = vst.msk [vmem:[#allocation0] sm:$0x1] %vm21_vm3, %v20_v17  }
  0x7b   :  { %28 = vst.msk [vmem:[#allocation0] sm:$0x1] %vm27_vm4, %v26_v19  }
  0x7c   :  { %v32_v20 = vpop.permute.xlu0 %31   ;;  %v38_v21 = vpop.permute.xlu1 %37  }
  0x7d   :  { %34 = vst.msk [vmem:[#allocation0] sm:$0x1] %vm33_vm5, %v32_v20  }
  0x7e   :  { %40 = vst.msk [vmem:[#allocation0] sm:$0x1] %vm39_vm6, %v38_v21  }
  0x80   :  { %v44_v22 = vpop.permute.xlu0 %43   ;;  %v50_v23 = vpop.permute.xlu1 %49  }
  0x81   :  { %46 = vst.msk [vmem:[#allocation0] sm:$0x1] %vm45_vm7, %v44_v22  }
  0x82   :  { %52 = vst.msk [vmem:[#allocation0] sm:$0x1] %vm51_vm8, %v50_v23  }
  0x84   :  { %v56_v24 = vpop.permute.xlu0 %55   ;;  %v62_v25 = vpop.permute.xlu1 %61  }
  0x85   :  { %58 = vst.msk [vmem:[#allocation0] sm:$0x1] %vm57_vm9, %v56_v24  }
  0x86   :  { %64 = vst.msk [vmem:[#allocation0] sm:$0x1] %vm63_vm10, %v62_v25  }
  0x88   :  { %v68_v26 = vpop.permute.xlu0 %67   ;;  %v74_v27 = vpop.permute.xlu1 %73  }
  0x89   :  { %70 = vst.msk [vmem:[#allocation0] sm:$0x1] %vm69_vm11, %v68_v26  }
  0x8a   :  { %76 = vst.msk [vmem:[#allocation0] sm:$0x1] %vm75_vm12, %v74_v27  }
  0x8c   :  { %v80_v28 = vpop.permute.xlu0 %79   ;;  %v86_v29 = vpop.permute.xlu1 %85  }
  0x8d   :  { %82 = vst.msk [vmem:[#allocation0] sm:$0x1] %vm81_vm13, %v80_v28  }
  0x8e   :  { %88 = vst.msk [vmem:[#allocation0] sm:$0x1] %vm87_vm14, %v86_v29  }
  0x90   :  { %v92_v30 = vpop.permute.xlu0 %91  }
  0x91   :  { %94 = vst.msk [vmem:[#allocation0] sm:$0x1] %vm93_vm15, %v92_v30  }
  0x98   :  { %v98_v31 = vld [vmem:[#allocation0] sm:$0x1] }
  0x99   :  { %100 = vst [vmem:[%s208_s1] sm:$0x1] %v98_v31 }

// kernel: enc_conv.3
= control target key start
LH: loop header
LB: loop body
LE: loop exit
PB: predicated region body
PF: predicated region fallthrough
CT: control target
= control target key end

     0   :  { %s460_s17 = smov 0   ;;  %s462_s18 = smov 0   ;;  %s514_s0 = inlined_call_operand.vmem [shape: f32[2,16,128], index: 0, kind: input, shape index: {}]   ;;  %s515_s1 = inlined_call_operand.vmem [shape: f32[1,128], index: 1, kind: input, shape index: {}]   ;;  %s516_s2 = inlined_call_operand.vmem [shape: f32[1,128], index: 2, kind: input, shape index: {}]   ;;  %s517_s3 = inlined_call_operand.<no memory space> [shape: f32[1], index: 3, kind: input, shape index: {}]   ;;  %s518_s4 = inlined_call_operand.vmem [shape: f32[2,16,128], index: 4, kind: output, shape index: {}]  }
   0x1   :  { %9 = sst [smem:[#allocation2]] %s517_s3  ;;  %s464_s19 = smov 0  }
   0x2   :  { %s466_s20 = smov 0   ;;  %s468_s21 = smov 0  }
   0x3 LB: > { %s24_s3 = sadd.s32 1, %s422_s19  ;;  %s27_s22 = sadd.s32 1, %s426_s20  ;;  %s430_s21 = sphi %s468_s21, %s15_s21   ;;  %s426_s20 = sphi %s466_s20, %s522_s20   ;;  %s422_s19 = sphi %s464_s19, %s521_s19   ;;  %s418_s18 = sphi %s462_s18, %s520_s18   ;;  %s414_s17 = sphi %s460_s17, %s519_s17  }
   0x4   : > { %p25_p0 = scmp.ge.s32.totalorder %s24_s3, 2  ;;  %p343_p1 = scmp.ge.s32.totalorder %s430_s21, 1 }
   0x5   : > { %p182_p2 = scmp.lt.s32.totalorder %s430_s21, 5 }
   0x6   : > { %s524_s3 = smov (%p25_p0, %s24_s3), 0  ;;  %s526_s22 = smov (!%p25_p0, %s27_s22), %s426_s20 }
   0x7   : > { %p183_p3 = pnand %p343_p1, %p182_p2  ;;  %p29_p4 = scmp.ge.s32.totalorder %s526_s22, 2 }
   0x8   : > { %p214_p5 = scmp.lt.s32.totalorder (!%p183_p3), %s418_s18, 1  ;;  %p216_p6 = scmp.lt.s32.totalorder (!%p183_p3), %s414_s17, 1  ;;  %v348_v0 = vld [vmem:[%s515_s1] ss:$0 sm:$0xff] (!%p183_p3) }
   0x9   : > { %s528_s22 = smov (%p29_p4, %s526_s22), 0  ;;  %186 = sbr.rel (%p183_p3) target bundleno = 30 (0x1e), region = 36 }
   0xa   : > { %s247_s23 = sld [smem:[#allocation2]] (!%p183_p3)  ;;  %v349_v2 = vld [vmem:[%s516_s2] ss:$0 sm:$0xff] (!%p183_p3) }
  0x10   : > { %s530_s18 = smov (!%p214_p5, %s418_s18), 1  ;;  %s532_s17 = smov (!%p216_p6, %s414_s17), 1  ;;  %v249_v4 = vstv %s247_s23 }
  0x11   : > { %s344_s24 = sshll.u32 %s530_s18, 1 }
  0x12   : > { %s219_s25 = sadd.s32 %s344_s24, %s532_s17 }
  0x13   : > { %s345_s26 = sshll.u32 %s219_s25, 3 }
  0x14   : > { %s221_s5 = scalar_lea.vmem %s514_s0, %s345_s26  ;;  %s229_s10 = scalar_lea.vmem %s518_s4, %s345_s26 }
  0x15   : > { %v230_v1 = vld [vmem:[%s221_s5] sm:$0xff] }
  0x16   : > { %v238_v3 = vmul.f32 %v348_v0, %v230_v1 }
  0x18   : > { %v246_v5 = vadd.f32 %v349_v2, %v238_v3 }
  0x1a   : > { %vm248_vm0 = vcmp.ge.f32.partialorder %v246_v5, 0.0  ;;  %v250_v6 = vmul.f32 %v249_v4, %v246_v5 }
  0x1c   : > { %v251_v7 = vsel %vm248_vm0, %v246_v5, %v250_v6 }
  0x1d   : > { %252 = vst [vmem:[%s229_s10] sm:$0xff] %v251_v7 }
  0x1e PF: > { %s15_s21 = sadd.s32 1, %s430_s21   ;;  %s519_s17 = smov %s422_s19 }
  0x1f   : > { %p12_p7 = scmp.ge.s32.totalorder %s15_s21, 6   ;;  %s520_s18 = smov %s426_s20 }
  0x20   : > { %s521_s19 = smov %s524_s3  ;;  %s522_s20 = smov %s528_s22 }
  0x21   :  { %14 = sbr.rel (!%p12_p7) target bundleno = 3 (0x3), region = 66 }

// kernel: enc_conv.2
= control target key start
LH: loop header
LB: loop body
LE: loop exit
PB: predicated region body
PF: predicated region fallthrough
CT: control target
= control target key end

     0   :  { %s1020_s18 = smov 0   ;;  %s1022_s19 = smov 0   ;;  %s1203_s0 = inlined_call_operand.vmem [shape: f32[2,18,72], index: 0, kind: input, shape index: {}]   ;;  %s1204_s1 = inlined_call_operand.vmem [shape: f32[3,72,128], index: 1, kind: input, shape index: {}]   ;;  %s1205_s2 = inlined_call_operand.vmem [shape: f32[1,128], index: 2, kind: input, shape index: {}]   ;;  %s1206_s3 = inlined_call_operand.vmem [shape: f32[2,16,128], index: 3, kind: output, shape index: {0}]   ;;  %s1207_s4 = inlined_call_operand.vmem [shape: f32[2,2,1,128], index: 4, kind: output, shape index: {1}]   ;;  %s1208_s5 = inlined_call_operand.vmem [shape: f32[2,2,1,128], index: 5, kind: output, shape index: {2}]  }
   0x1   :  { %s1024_s20 = smov 0   ;;  %s1026_s21 = smov 0  }
   0x2   :  { %s1028_s22 = smov 0  }
   0x3 LB: > { %s25_s23 = sadd.s32 1, %s977_s20  ;;  %s28_s24 = sadd.s32 1, %s981_s21  ;;  %s985_s22 = sphi %s1028_s22, %s16_s22   ;;  %s981_s21 = sphi %s1026_s21, %s1212_s21   ;;  %s977_s20 = sphi %s1024_s20, %s1211_s20   ;;  %s973_s19 = sphi %s1022_s19, %s1210_s19   ;;  %s969_s18 = sphi %s1020_s18, %s1209_s18  }
   0x4   : > { %p26_p0 = scmp.ge.s32.totalorder %s25_s23, 2  ;;  %p739_p1 = scmp.ge.s32.totalorder %s985_s22, 1 }
   0x5   : > { %p210_p2 = scmp.lt.s32.totalorder %s985_s22, 5 }
   0x6   : > { %s1214_s23 = smov (%p26_p0, %s25_s23), 0  ;;  %s1216_s24 = smov (!%p26_p0, %s28_s24), %s981_s21 }
   0x7   : > { %p211_p3 = pnand %p739_p1, %p210_p2  ;;  %p30_p4 = scmp.ge.s32.totalorder %s1216_s24, 2 }
   0x8   : > { %v748_v0 = vld [vmem:[%s1204_s1 + $0x48] sm:$0xff] (!%p211_p3)  ;;  %v749_v1 = vld [vmem:[%s1204_s1 + $0x50] sm:$0xff] (!%p211_p3)  ;;  %v285_v2 = vld [vmem:[%s1204_s1] sm:$0xff] (!%p211_p3)  ;;  %v987_v3 = vmov (!%p211_p3), 0.0|0.0   ;;  %p255_p5 = scmp.lt.s32.totalorder (!%p211_p3), %s973_s19, 1  ;;  %vm988_vm0 = vmmov (!%p211_p3), 0  }
   0x9   : > { %s1218_s24 = smov (%p30_p4, %s1216_s24), 0  ;;  %214 = sbr.rel (%p211_p3) target bundleno = 279 (0x117), region = 32 }
   0xa   : > { %867 = vmatprep.subr.bf16.mxu0 (!%p211_p3), %v987_v3  ;;  %v868_v4 = vpack.c.bf16 (!%p211_p3), %v749_v1, %v748_v0  ;;  %879 = vmatprep.subr.bf16.mxu1 (!%p211_p3), %v987_v3  ;;  %v286_v5 = vld [vmem:[%s1204_s1 + $0x8] sm:$0xff] (!%p211_p3)  ;;  %v750_v6 = vld [vmem:[%s1204_s1 + $0x58] sm:$0xff] (!%p211_p3)  ;;  %v751_v7 = vld [vmem:[%s1204_s1 + $0x60] sm:$0xff] (!%p211_p3)  ;;  %v989_v11 = vmov (!%p211_p3), 0.0   ;;  %s745_s25 = sshll.u32 (!%p211_p3), %s969_s18, 3  ;;  %vm307_vm1 = vcmask (!%p211_p3), 588800  }
   0xb   : > { %v880_v8 = vpack.c.bf16 (!%p211_p3), %v286_v5, %v285_v2  ;;  %v287_v9 = vld [vmem:[%s1204_s1 + $0x10] sm:$0xff] (!%p211_p3)  ;;  %v288_v10 = vld [vmem:[%s1204_s1 + $0x18] sm:$0xff] (!%p211_p3)  ;;  %822 = vmatprep.mubr.msk.f32.mxu0 (!%p211_p3), %vm988_vm0, %v989_v11  ;;  %843 = vmatprep.mubr.msk.f32.mxu1 (!%p211_p3), %vm988_vm0, %v989_v11  ;;  %v871_v12 = vpack.c.bf16 (!%p211_p3), %v751_v7, %v750_v6  ;;  %v752_v14 = vld [vmem:[%s1204_s1 + $0x68] sm:$0xff] (!%p211_p3)  ;;  %p262_p6 = scmp.lt.s32.totalorder (!%p211_p3), %s969_s18, 1 }
   0xc   : > { %869 = vmatpush3.bf16.msra.mxu0 (!%p211_p3), %v868_v4  ;;  %v883_v13 = vpack.c.bf16 (!%p211_p3), %v288_v10, %v287_v9  ;;  %v753_v15 = vld [vmem:[%s1204_s1 + $0x70] sm:$0xff] (!%p211_p3)  ;;  %v289_v16 = vld [vmem:[%s1204_s1 + $0x20] sm:$0xff] (!%p211_p3)  ;;  %v290_v17 = vld [vmem:[%s1204_s1 + $0x28] sm:$0xff] (!%p211_p3) }
   0xd   : > { %881 = vmatpush3.bf16.msra.mxu1 (!%p211_p3), %v880_v8  ;;  %870 = vmatprep.subr.bf16.mxu0 (!%p211_p3), %v987_v3  ;;  %v874_v18 = vpack.c.bf16 (!%p211_p3), %v753_v15, %v752_v14  ;;  %v886_v19 = vpack.c.bf16 (!%p211_p3), %v290_v17, %v289_v16  ;;  %v754_v20 = vld [vmem:[%s1204_s1 + $0x78] sm:$0xff] (!%p211_p3)  ;;  %v755_v21 = vld [vmem:[%s1204_s1 + $0x80] sm:$0xff] (!%p211_p3)  ;;  %v291_v22 = vld [vmem:[%s1204_s1 + $0x30] sm:$0xff] (!%p211_p3) }
   0xe   : > { %882 = vmatprep.subr.bf16.mxu1 (!%p211_p3), %v987_v3  ;;  %v292_v23 = vld [vmem:[%s1204_s1 + $0x38] sm:$0xff] (!%p211_p3)  ;;  %v877_v24 = vpack.c.bf16 (!%p211_p3), %v755_v21, %v754_v20  ;;  %v761_v26 = vld [vmem:[%s1204_s1 + $0x90] sm:$0xff] (!%p211_p3)  ;;  %v756_v28 = vld [vmem:[%s1204_s1 + $0x88] sm:$0xff] (!%p211_p3) }
   0xf   : > { %v889_v25 = vpack.c.bf16 (!%p211_p3), %v292_v23, %v291_v22  ;;  %v762_v27 = vld [vmem:[%s1204_s1 + $0x98] sm:$0xff] (!%p211_p3)  ;;  %v293_v30 = vld [vmem:[%s1204_s1 + $0x40] sm:$0xff] (!%p211_p3)  ;;  %v764_v34 = vld [vmem:[%s1204_s1 + $0xa8] sm:$0xff] (!%p211_p3) }
  0x10   : > { %s1220_s19 = smov (!%p255_p5, %s973_s19), 1  ;;  %872 = vmatpush3.bf16.msra.mxu0 %v871_v12  ;;  %v892_v32 = vpack.c.bf16 %v762_v27, %v761_v26  ;;  %v763_v33 = vld [vmem:[%s1204_s1 + $0xa0] sm:$0xff]  ;;  %v765_v36 = vld [vmem:[%s1204_s1 + $0xb0] sm:$0xff]  ;;  %v766_v37 = vld [vmem:[%s1204_s1 + $0xb8] sm:$0xff]  ;;  %s1222_s18 = smov (!%p262_p6, %s969_s18), 1 }
  0x11   : > { %s903_s6 = smul.u32 24, %s1220_s19  ;;  %884 = vmatpush3.bf16.msra.mxu1 %v883_v13  ;;  %873 = vmatprep.subr.bf16.mxu0 %v987_v3  ;;  %v895_v35 = vpack.c.bf16 %v764_v34, %v763_v33  ;;  %v898_v38 = vpack.c.bf16 %v766_v37, %v765_v36  ;;  %v767_v39 = vld [vmem:[%s1204_s1 + $0xc0] sm:$0xff]  ;;  %v768_v40 = vld [vmem:[%s1204_s1 + $0xc8] sm:$0xff]  ;;  %v769_v42 = vld [vmem:[%s1204_s1 + $0xd0] sm:$0xff]  ;;  %s741_s7 = sshll.u32 %s1220_s19, 1 }
  0x12   : > { %885 = vmatprep.subr.bf16.mxu1 %v987_v3  ;;  %v901_v41 = vpack.c.bf16 %v768_v40, %v767_v39  ;;  %s265_s8 = sadd.s32 %s741_s7, %s1222_s18  ;;  %v771_v50 = vld [vmem:[%s1205_s2] ss:$0 sm:$0xff] }
  0x13   : > { %s259_s17 = scalar_lea.vmem %s1203_s0, %s903_s6  ;;  %s742_s9 = sshll.u32 %s265_s8, 3 }
  0x14   : > { %875 = vmatpush3.bf16.msra.mxu0 %v874_v18  ;;  %s1123_s26 = scalar_lea.vmem %s259_s17, %s745_s25  ;;  %s267_s13 = scalar_lea.vmem %s1206_s3, %s742_s9 }
  0x15   : > { %887 = vmatpush3.bf16.msra.mxu1 %v886_v19  ;;  %876 = vmatprep.subr.bf16.mxu0 %v987_v3  ;;  %v747_v29 = vld [vmem:[%s1123_s26 + $0x1] sm:$0xff]  ;;  %s274_s14 = scalar_lea.vmem %s1207_s4, %s265_s8  ;;  %s281_s17 = scalar_lea.vmem %s1208_s5, %s265_s8 }
  0x16   : > { %888 = vmatprep.subr.bf16.mxu1 %v987_v3  ;;  %v284_v31 = vld [vmem:[%s1123_s26] sm:$0xff] }
  0x17   : > { %v760_v43 = vld [vmem:[%s1123_s26 + $0x2] sm:$0xff] }
  0x18   : > { %878 = vmatpush3.bf16.msra.mxu0 %v877_v24 }
  0x19   : > { %890 = vmatpush3.bf16.msra.mxu1 %v889_v25  ;;  %820 = vmatprep.subr.mxu0 %v989_v11 }
  0x1a   : > { %841 = vmatprep.subr.mxu1 %v989_v11 }
  0x1c   : > { %821 = vmatpush3.msra.mxu0 %v756_v28 }
  0x1d   : > { %823 = vmatmul.mubr.msk.f32.vlgmr.msra.gmra.mrb[0].mxu0 %vm307_vm1, %v747_v29  ;;  %842 = vmatpush3.msra.mxu1 %v293_v30 }
  0x1e   : > { %891 = vmatprep.subr.bf16.mxu0 %v987_v3  ;;  %844 = vmatmul.mubr.msk.f32.vlgmr.msra.gmra.mrb[0].mxu1 %vm307_vm1, %v284_v31 }
  0x1f   : > { %893 = vmatpush3.bf16.msra.mxu0 %v892_v32  ;;  %864 = vmatprep.mubr.msk.f32.mxu0 %vm988_vm0, %v989_v11 }
  0x20   : > { %894 = vmatprep.subr.bf16.mxu0 %v987_v3 }
  0x23   : > { %896 = vmatpush3.bf16.msra.mxu0 %v895_v35 }
  0x24   : > { %897 = vmatprep.subr.bf16.mxu0 %v987_v3 }
  0x27   : > { %899 = vmatpush3.bf16.msra.mxu0 %v898_v38 }
  0x28   : > { %900 = vmatprep.subr.bf16.mxu0 %v987_v3 }
  0x2b   : > { %902 = vmatpush3.bf16.msra.mxu0 %v901_v41 }
  0x2c   : > { %862 = vmatprep.subr.mxu0 %v989_v11 }
  0x2f   : > { %863 = vmatpush3.msra.mxu0 %v769_v42 }
  0x30   : > { %865 = vmatmul.mubr.msk.f32.vlgmr.msra.gmra.mrb[2].mxu0 %vm307_vm1, %v760_v43 }
  0xf0   : > { %v377_v44 = vpop.f32.mrb[0].mxu0 }
  0xf1   : > { %v824_v45 = vpop.f32.mrb[1].mxu0  ;;  %v450_v46 = vpop.f32.mrb[0].mxu1 }
  0xf2   : > { %v451_v47 = vadd.f32 %v450_v46, %v377_v44  ;;  %v845_v48 = vpop.f32.mrb[1].mxu1 }
 0x103   : > { %v536_v49 = vpop.f32.mrb[2].mxu0 }
 0x104   : > { %v540_v51 = vadd.f32 %v536_v49, %v451_v47  ;;  %v866_v52 = vpop.f32.mrb[3].mxu0 }
 0x106   : > { %v548_v53 = vadd.f32 %v771_v50, %v540_v51 }
 0x108   : > { %549 = vst [vmem:[%s267_s13] sm:$0xff] %v548_v53  ;;  %v550_v54 = vrot.slane %v548_v53, 4  ;;  %v557_v55 = vmul.f32 %v548_v53, %v548_v53 }
 0x10a   : > { %v551_v56 = vadd.f32 %v550_v54, %v548_v53  ;;  %v558_v57 = vrot.slane %v557_v55, 4 }
 0x10c   : > { %v552_v58 = vrot.slane %v551_v56, 2  ;;  %v559_v59 = vadd.f32 %v558_v57, %v557_v55 }
 0x10e   : > { %v553_v60 = vadd.f32 %v552_v58, %v551_v56  ;;  %v560_v61 = vrot.slane %v559_v59, 2 }
 0x110   : > { %v554_v62 = vrot.slane %v553_v60, 1  ;;  %v561_v63 = vadd.f32 %v560_v61, %v559_v59 }
 0x112   : > { %v555_v0 = vadd.f32 %v554_v62, %v553_v60  ;;  %v562_v1 = vrot.slane %v561_v63, 1 }
 0x114   : > { %556 = vst [vmem:[%s274_s14] sm:$0x1] %v555_v0  ;;  %v563_v2 = vadd.f32 %v562_v1, %v561_v63 }
 0x116   : > { %564 = vst [vmem:[%s281_s17] sm:$0x1] %v563_v2 }
 0x117 PF: > { %s16_s22 = sadd.s32 1, %s985_s22   ;;  %s1209_s18 = smov %s977_s20 }
 0x118   : > { %p13_p7 = scmp.ge.s32.totalorder %s16_s22, 6   ;;  %s1210_s19 = smov %s981_s21 }
 0x119   : > { %s1211_s20 = smov %s1214_s23  ;;  %s1212_s21 = smov %s1218_s24 }
 0x11a   :  { %15 = sbr.rel (!%p13_p7) target bundleno = 3 (0x3), region = 91 }

</bundles_post_ra>
